<compile_context>
chip_gen: v7x
topology: tpu7x:2x2x1
jax: 0.10.0
libtpu: 0.0.40
codegen_flags: <defaults>
</compile_context>

<pallas_src>
import jax
import jax.numpy as jnp
from jax.experimental import pallas as pl
from jax.experimental.pallas import tpu as pltpu

IN_FEATURES = 24
OUT_FEATURES = 2

# Row-packing factor: 64 rows -> 1536 input lanes / 128 output lanes,
# i.e. exactly lane-dense on both sides of the matmul.
PACK = 64
PACKED_IN = IN_FEATURES * PACK    # 1536
PACKED_OUT = OUT_FEATURES * PACK  # 128

# Cap on ORIGINAL rows per grid step (per-buffer x tile = tile_rows*96 B).
DEFAULT_TILE_ROWS = 16384

# Below this many rows, skip Pallas entirely (launch overhead dominates).
DEFAULT_MIN_PALLAS_ROWS = 4096


def _round_up(n, m):
    return ((n + m - 1) // m) * m


def _lr_kernel(x_ref, w_ref, b_ref, o_ref):
    # x_ref: (tile_p, 1536) packed rows (64 original rows per packed row)
    # w_ref: (1536, 128) block-diagonal weight (64 copies of W^T)
    # b_ref: (1, 128)    bias tiled 64x
    # o_ref: (tile_p, 128) -> flattens to row-major (tile_p*64, 2)
    logits = jnp.dot(x_ref[...], w_ref[...],
                     preferred_element_type=jnp.float32) + b_ref[...]
    o_ref[...] = jax.nn.sigmoid(logits).astype(o_ref.dtype)


def _lr_forward_pallas(x, weight, bias, *, tile_rows):
    B = x.shape[0]

    # Pad the batch so it packs into at least 8 full packed rows; pad rows
    # are computed on and dropped at the end.  (No pad copy when B is
    # already a multiple of 64 and >= 512.)
    B_pad = max(_round_up(B, PACK), 8 * PACK)
    if B_pad != B:
        x = jnp.pad(x, ((0, B_pad - B), (0, 0)))
    R = B_pad // PACK

    # Packed view of x: row-major reshape, bit-identical memory layout.
    x_packed = x.reshape(R, PACKED_IN)

    # Block-diagonal weight: kron(I_PACK, W^T) so each 24-lane chunk of a
    # packed row hits its own copy of the (24 -> 2) linear.
    w_big = jnp.kron(jnp.eye(PACK, dtype=weight.dtype), weight.T)  # (1536, 128)
    b_big = jnp.tile(bias, PACK).reshape(1, PACKED_OUT)            # (1, 128)

    # Tile selection (in packed rows): target ~8 grid steps for megacore
    # sharding (v7x) + DMA/compute pipelining, capped so the per-step VMEM
    # footprint stays small on every generation.
    cap_p = max(8, tile_rows // PACK)                      # default 256 -> 1.5 MiB/buffer
    tile_p = min(cap_p, max(8, _round_up(pl.cdiv(R, 8), 8)))
    grid = (pl.cdiv(R, tile_p),)

    cost = pl.CostEstimate(
        flops=2 * B_pad * IN_FEATURES * OUT_FEATURES,
        transcendentals=B_pad * OUT_FEATURES,
        bytes_accessed=4 * (B_pad * IN_FEATURES + B_pad * OUT_FEATURES
                            + PACKED_IN * PACKED_OUT + PACKED_OUT),
    )

    out_packed = pl.pallas_call(
        _lr_kernel,
        out_shape=jax.ShapeDtypeStruct((R, PACKED_OUT), x.dtype),
        grid_spec=pl.GridSpec(
            grid=grid,
            in_specs=[
                pl.BlockSpec((tile_p, PACKED_IN), lambda i: (i, 0)),
                pl.BlockSpec((PACKED_IN, PACKED_OUT), lambda i: (0, 0)),
                pl.BlockSpec((1, PACKED_OUT), lambda i: (0, 0)),
            ],
            out_specs=pl.BlockSpec((tile_p, PACKED_OUT), lambda i: (i, 0)),
        ),
        compiler_params=pltpu.CompilerParams(
            # Batch tiles are independent -> v7x shards the grid across both
            # TensorCores; neutral on v5e/v6e.
            dimension_semantics=("parallel",),
        ),
        cost_estimate=cost,
    )(x_packed, w_big, b_big)

    # (R, 128) -> (B_pad, 2) is a free row-major reshape; drop pad rows.
    out = out_packed.reshape(B_pad, OUT_FEATURES)
    return out[:B] if B_pad != B else out


def lr_forward(x, weight, bias, *,
               tile_rows=DEFAULT_TILE_ROWS,
               min_pallas_rows=DEFAULT_MIN_PALLAS_ROWS):
    """sigmoid(x @ weight.T + bias).

    x: (B, 24) f32, weight: (2, 24) f32 (PyTorch layout), bias: (2,) f32.
    Returns (B, 2) f32.
    """
    if x.shape[0] < min_pallas_rows:
        # Small-batch fast path: a pallas_call here is pure launch overhead.
        return jax.nn.sigmoid(x @ weight.T + bias)
    return _lr_forward_pallas(x, weight, bias, tile_rows=tile_rows)


if __name__ == "__main__":
    key = jax.random.PRNGKey(0)
    kx, kw, kb, kx2 = jax.random.split(key, 4)

    # Deterministic parameters matching nn.Linear(24, 2):
    # weight (2, 24), bias (2,), uniform(-1/sqrt(24), 1/sqrt(24)).
    bound = 1.0 / (IN_FEATURES ** 0.5)
    weight = jax.random.uniform(
        kw, (OUT_FEATURES, IN_FEATURES), jnp.float32, -bound, bound)
    bias = jax.random.uniform(kb, (OUT_FEATURES,), jnp.float32, -bound, bound)

    # Small batch, forced through the Pallas path (single-block case).
    B = 8
    x = jax.random.normal(kx, (B, IN_FEATURES), jnp.float32)
    out = jax.block_until_ready(lr_forward(x, weight, bias, min_pallas_rows=0))
    ref = jax.nn.sigmoid(x @ weight.T + bias)
    assert out.shape == (B, OUT_FEATURES)
    assert jnp.allclose(out, ref, atol=1e-4, rtol=1e-4)

    # Non-multiple-of-64 batch with a small tile cap to exercise batch
    # padding, the multi-step pipelined grid, and a partial trailing tile.
    B2 = 3000
    x2 = jax.random.normal(kx2, (B2, IN_FEATURES), jnp.float32)
    out2 = jax.block_until_ready(
        lr_forward(x2, weight, bias, tile_rows=512, min_pallas_rows=0))
    ref2 = jax.nn.sigmoid(x2 @ weight.T + bias)
    assert out2.shape == (B2, OUT_FEATURES)
    assert jnp.allclose(out2, ref2, atol=1e-4, rtol=1e-4)

    # Default small-batch fast path (no Pallas launch) also matches.
    out3 = jax.block_until_ready(lr_forward(x, weight, bias))
    assert jnp.allclose(out3, ref, atol=1e-4, rtol=1e-4)

    print("KERNEL_OK")
</pallas_src>

<mosaic_0001>
module attributes {stable_mosaic.version = 11 : i64} {
  func.func @_lr_kernel(%arg0: i32, %arg1: memref<8x1536xf32, #tpu.memory_space<vmem>>, %arg2: memref<1536x128xf32, #tpu.memory_space<vmem>>, %arg3: memref<1x128xf32, #tpu.memory_space<vmem>>, %arg4: memref<8x128xf32, #tpu.memory_space<vmem>>) attributes {dimension_semantics = [#tpu.dimension_semantics<parallel>], iteration_bounds = array<i64: 1>, scalar_prefetch = 0 : i64, scratch_operands = 0 : i64, tpu.core_type = #tpu.core_type<tc>, window_params = [{transform_indices = @transform_0, window_bounds = array<i64: 8, 1536>}, {pipeline_mode = #tpu.pipeline_mode<synchronous>, transform_indices = @transform_1, window_bounds = array<i64: 1536, 128>}, {pipeline_mode = #tpu.pipeline_mode<synchronous>, transform_indices = @transform_2, window_bounds = array<i64: 1, 128>}, {transform_indices = @transform_3, window_bounds = array<i64: 8, 128>}]} {
    %c0 = arith.constant 0 : index
    %c0_0 = arith.constant 0 : index
    %0 = vector.load %arg1[%c0, %c0_0] : memref<8x1536xf32, #tpu.memory_space<vmem>>, vector<8x1536xf32>
    %c0_1 = arith.constant 0 : index
    %c0_2 = arith.constant 0 : index
    %1 = vector.load %arg2[%c0_1, %c0_2] : memref<1536x128xf32, #tpu.memory_space<vmem>>, vector<1536x128xf32>
    %cst = arith.constant dense<0.000000e+00> : vector<8x128xf32>
    %2 = tpu.matmul %0, %1, %cst {dimension_numbers = #tpu.dot_dimension_numbers<[1], [0], [0], [1], [0, 0, 1, 1], [], []>} : vector<8x1536xf32>, vector<1536x128xf32>, vector<8x128xf32> -> vector<8x128xf32>
    %c0_3 = arith.constant 0 : index
    %c0_4 = arith.constant 0 : index
    %3 = vector.load %arg3[%c0_3, %c0_4] : memref<1x128xf32, #tpu.memory_space<vmem>>, vector<1x128xf32>
    %4 = vector.broadcast %3 : vector<1x128xf32> to vector<8x128xf32>
    %5 = arith.addf %2, %4 : vector<8x128xf32>
    %6 = arith.negf %5 : vector<8x128xf32>
    %7 = math.exp %6 : vector<8x128xf32>
    %cst_5 = arith.constant 1.000000e+00 : f32
    %8 = vector.broadcast %cst_5 : f32 to vector<8x128xf32>
    %9 = arith.addf %8, %7 : vector<8x128xf32>
    %10 = arith.divf %8, %9 : vector<8x128xf32>
    %c0_6 = arith.constant 0 : index
    %c0_7 = arith.constant 0 : index
    %11 = vector.load %arg4[%c0_6, %c0_7] : memref<8x128xf32, #tpu.memory_space<vmem>>, vector<8x128xf32>
    tpu.vector_store %arg4[%c0_6, %c0_7], %10 {strides = array<i32>} : memref<8x128xf32, #tpu.memory_space<vmem>>, vector<8x128xf32>,
    return
  }
  func.func @transform_0(%arg0: i32) -> (i32, i32) {
    %c0_i32 = arith.constant 0 : i32
    %c0_i32_0 = arith.constant 0 : i32
    return %arg0, %c0_i32 : i32, i32
  }
  func.func @transform_1(%arg0: i32) -> (i32, i32) {
    %c0_i32 = arith.constant 0 : i32
    %c0_i32_0 = arith.constant 0 : i32
    %c0_i32_1 = arith.constant 0 : i32
    return %c0_i32, %c0_i32_0 : i32, i32
  }
  func.func @transform_2(%arg0: i32) -> (i32, i32) {
    %c0_i32 = arith.constant 0 : i32
    %c0_i32_0 = arith.constant 0 : i32
    %c0_i32_1 = arith.constant 0 : i32
    return %c0_i32, %c0_i32_0 : i32, i32
  }
  func.func @transform_3(%arg0: i32) -> (i32, i32) {
    %c0_i32 = arith.constant 0 : i32
    %c0_i32_0 = arith.constant 0 : i32
    return %arg0, %c0_i32 : i32, i32
  }
}

</mosaic_0001>

<bundles_post_ra>
// kernel: tpu_custom_call.1
= control target key start
LH: loop header
LB: loop body
LE: loop exit
PB: predicated region body
PF: predicated region fallthrough
CT: control target
= control target key end

     0   :  { %8 = vsyncpa [#allocation3], 0  ;;  %s1251_s0 = inlined_call_operand.hbm [shape: f32[8,1536], index: 0, kind: input, shape index: {}]   ;;  %s1252_s1 = inlined_call_operand.hbm [shape: f32[1536,128], index: 1, kind: input, shape index: {}]   ;;  %s1253_s2 = inlined_call_operand.vmem [shape: f32[1,128], index: 2, kind: input, shape index: {}]   ;;  %s1254_s3 = inlined_call_operand.hbm [shape: f32[8,128], index: 3, kind: output, shape index: {}]  }
   0x1   :  { %9 = vsyncpa [#allocation6], 0 }
   0x2   :  { %10 = vsyncpa [#allocation4], 0  ;;  %s1180_s12 = smov [#allocation2]   ;;  %s1181_s14 = smov [#allocation5]  }
   0x3   :  { %s17_s13 = sshll.u32 %s1180_s12, 4  ;;  %s26_s15 = sshll.u32 %s1181_s14, 4  ;;  %s18_s13 = int_to_ptr.vmem [resolvable:$true] %s17_s13  ;;  %s1205_s15 = int_to_ptr.vmem [resolvable:$true] %s26_s15 }
   0x4   :  { %s1108_s18 = scalar_lea.hbm %s1251_s0, 1536 }
   0x5   :  { %p1109_p0 = scmp.ne.s32.totalorder %s1251_s0, %s1108_s18  ;;  %p1112_p1 = scmp.lt.u32.totalorder %s1108_s18, %s1251_s0 }
   0x7   :  { %p1114_p2 = pnand %p1112_p1, %p1109_p0 }
   0x9   :  { %1117 = shalt.err (!%p1114_p2)
}
   0xa   :  { %s1118_s23 = scalar_lea.vmem %s18_s13, 1536  ;;  %p1123_p4 = scmp.lt.s32.totalorder %s18_s13, %s18_s13 }
   0xb   :  { %p1119_p3 = scmp.ne.s32.totalorder %s18_s13, %s1118_s23  ;;  %p1124_p5 = scmp.lt.s32.totalorder %s1118_s23, %s1118_s23 }
   0xd   :  { %p1125_p6 = por %p1124_p5, %p1123_p4 }
   0xf   :  { %p1126_p7 = pnand %p1125_p6, %p1119_p3 }
  0x11   :  { %1129 = shalt.err (!%p1126_p7)
}
  0x12   :  { %20 = dma.hbm_to_vmem [thread:$0]  %s1251_s0, 1536, %s18_s13, [#allocation3]  }
  0x13   :  { %s1130_s28 = scalar_lea.hbm %s1252_s1, 24576 }
  0x14   :  { %p1131_p8 = scmp.ne.s32.totalorder %s1252_s1, %s1130_s28  ;;  %p1134_p9 = scmp.lt.u32.totalorder %s1130_s28, %s1252_s1 }
  0x16   :  { %p1136_p10 = pnand %p1134_p9, %p1131_p8 }
  0x18   :  { %1139 = shalt.err (!%p1136_p10)
}
  0x19   :  { %s1140_s6 = scalar_lea.vmem %s1205_s15, 24576  ;;  %p1145_p12 = scmp.lt.s32.totalorder %s1205_s15, %s1205_s15 }
  0x1a   :  { %p1141_p11 = scmp.ne.s32.totalorder %s1205_s15, %s1140_s6  ;;  %p1146_p13 = scmp.lt.s32.totalorder %s1140_s6, %s1140_s6 }
  0x1c   :  { %p1147_p0 = por %p1146_p13, %p1145_p12 }
  0x1e   :  { %p1148_p1 = pnand %p1147_p0, %p1141_p11 }
  0x20   :  { %1151 = shalt.err (!%p1148_p1)
}
  0x21   :  { %s1182_s0 = smov 128   ;;  %s1183_s7 = smov 8  }
  0x22   :  { %32 = dma.hbm_to_vmem [thread:$0]  %s1252_s1, 24576, %s1205_s15, [#allocation6], %s1182_s0, %s1182_s0, %s1183_s7  }
  0x23   :  { %1174 = dma.done.wait [#allocation3], 1536  }
  0x24   :  { %1175 = vsyncadd [#allocation3], 4294965760 }
  0x25   :  { %1176 = dma.done.wait [#allocation6], 24576  }
  0x26   :  { %1177 = vsyncadd [#allocation6], 4294942720  ;;  %v69_v0 = vld [vmem:[#allocation5 + $0x80] sm:$0xff]  ;;  %v70_v1 = vld [vmem:[#allocation5 + $0x88] sm:$0xff] }
  0x27   :  { %v53_v2 = vld [vmem:[#allocation5] sm:$0xff]  ;;  %v907_v3 = vpack.c.bf16 %v70_v1, %v69_v0  ;;  %v54_v4 = vld [vmem:[#allocation5 + $0x8] sm:$0xff]  ;;  %v71_v11 = vld [vmem:[#allocation5 + $0x90] sm:$0xff] }
  0x28   :  { %v101_v5 = vld [vmem:[#allocation5 + $0x180] sm:$0xff]  ;;  %v102_v6 = vld [vmem:[#allocation5 + $0x188] sm:$0xff]  ;;  %v909_v7 = vpack.c.bf16 %v54_v4, %v53_v2  ;;  %v72_v13 = vld [vmem:[#allocation5 + $0x98] sm:$0xff] }
  0x29   :  { %v939_v8 = vpack.c.bf16 %v102_v6, %v101_v5  ;;  %v85_v9 = vld [vmem:[#allocation5 + $0x100] sm:$0xff]  ;;  %v86_v10 = vld [vmem:[#allocation5 + $0x108] sm:$0xff]  ;;  %908 = vmatprep.subr.bf16.mxu0 %v907_v3  ;;  %v55_v14 = vld [vmem:[#allocation5 + $0x10] sm:$0xff]  ;;  %v911_v16 = vpack.c.bf16 %v72_v13, %v71_v11 }
  0x2a   :  { %v941_v12 = vpack.c.bf16 %v86_v10, %v85_v9  ;;  %v56_v15 = vld [vmem:[#allocation5 + $0x18] sm:$0xff]  ;;  %910 = vmatpush3.bf16.msra.mxu0 %v909_v7  ;;  %v103_v18 = vld [vmem:[#allocation5 + $0x190] sm:$0xff]  ;;  %v73_v23 = vld [vmem:[#allocation5 + $0xa0] sm:$0xff] }
  0x2b   :  { %940 = vmatprep.subr.bf16.mxu1 %v939_v8  ;;  %v913_v17 = vpack.c.bf16 %v56_v15, %v55_v14  ;;  %v104_v19 = vld [vmem:[#allocation5 + $0x198] sm:$0xff]  ;;  %v87_v20 = vld [vmem:[#allocation5 + $0x110] sm:$0xff]  ;;  %v74_v24 = vld [vmem:[#allocation5 + $0xa8] sm:$0xff]  ;;  %912 = vmatprep.subr.bf16.mxu0 %v911_v16 }
  0x2c   :  { %942 = vmatpush3.bf16.msra.mxu1 %v941_v12  ;;  %v943_v21 = vpack.c.bf16 %v104_v19, %v103_v18  ;;  %v88_v22 = vld [vmem:[#allocation5 + $0x118] sm:$0xff]  ;;  %v915_v26 = vpack.c.bf16 %v74_v24, %v73_v23  ;;  %v57_v27 = vld [vmem:[#allocation5 + $0x20] sm:$0xff]  ;;  %v58_v28 = vld [vmem:[#allocation5 + $0x28] sm:$0xff] }
  0x2d   :  { %v945_v25 = vpack.c.bf16 %v88_v22, %v87_v20  ;;  %v105_v29 = vld [vmem:[#allocation5 + $0x1a0] sm:$0xff]  ;;  %v106_v30 = vld [vmem:[#allocation5 + $0x1a8] sm:$0xff]  ;;  %v917_v33 = vpack.c.bf16 %v58_v28, %v57_v27  ;;  %v75_v35 = vld [vmem:[#allocation5 + $0xb0] sm:$0xff] }
  0x2e   :  { %944 = vmatprep.subr.bf16.mxu1 %v943_v21  ;;  %v89_v31 = vld [vmem:[#allocation5 + $0x120] sm:$0xff]  ;;  %v90_v32 = vld [vmem:[#allocation5 + $0x128] sm:$0xff]  ;;  %914 = vmatpush3.bf16.msra.mxu0 %v913_v17  ;;  %v947_v34 = vpack.c.bf16 %v106_v30, %v105_v29  ;;  %v76_v36 = vld [vmem:[#allocation5 + $0xb8] sm:$0xff] }
  0x2f   :  { %v59_v37 = vld [vmem:[#allocation5 + $0x30] sm:$0xff]  ;;  %916 = vmatprep.subr.bf16.mxu0 %v915_v26  ;;  %v949_v38 = vpack.c.bf16 %v90_v32, %v89_v31  ;;  %v919_v39 = vpack.c.bf16 %v76_v36, %v75_v35  ;;  %v60_v40 = vld [vmem:[#allocation5 + $0x38] sm:$0xff]  ;;  %v77_v46 = vld [vmem:[#allocation5 + $0xc0] sm:$0xff] }
  0x30   :  { %946 = vmatpush3.bf16.msra.mxu1 %v945_v25  ;;  %v107_v41 = vld [vmem:[#allocation5 + $0x1b0] sm:$0xff]  ;;  %v108_v42 = vld [vmem:[#allocation5 + $0x1b8] sm:$0xff]  ;;  %v78_v47 = vld [vmem:[#allocation5 + $0xc8] sm:$0xff]  ;;  %v921_v48 = vpack.c.bf16 %v60_v40, %v59_v37 }
  0x31   :  { %948 = vmatprep.subr.bf16.mxu1 %v947_v34  ;;  %v951_v43 = vpack.c.bf16 %v108_v42, %v107_v41  ;;  %v91_v44 = vld [vmem:[#allocation5 + $0x130] sm:$0xff]  ;;  %v92_v45 = vld [vmem:[#allocation5 + $0x138] sm:$0xff]  ;;  %v109_v49 = vld [vmem:[#allocation5 + $0x1c0] sm:$0xff]  ;;  %v923_v52 = vpack.c.bf16 %v78_v47, %v77_v46 }
  0x32   :  { %918 = vmatpush3.bf16.msra.mxu0 %v917_v33  ;;  %v110_v50 = vld [vmem:[#allocation5 + $0x1c8] sm:$0xff]  ;;  %v953_v51 = vpack.c.bf16 %v92_v45, %v91_v44  ;;  %v61_v53 = vld [vmem:[#allocation5 + $0x40] sm:$0xff]  ;;  %v79_v58 = vld [vmem:[#allocation5 + $0xd0] sm:$0xff] }
  0x33   :  { %920 = vmatprep.subr.bf16.mxu0 %v919_v39  ;;  %v62_v54 = vld [vmem:[#allocation5 + $0x48] sm:$0xff]  ;;  %v93_v55 = vld [vmem:[#allocation5 + $0x140] sm:$0xff]  ;;  %v955_v56 = vpack.c.bf16 %v110_v50, %v109_v49  ;;  %v80_v59 = vld [vmem:[#allocation5 + $0xd8] sm:$0xff] }
  0x34   :  { %950 = vmatpush3.bf16.msra.mxu1 %v949_v38  ;;  %v94_v57 = vld [vmem:[#allocation5 + $0x148] sm:$0xff]  ;;  %v111_v60 = vld [vmem:[#allocation5 + $0x1d0] sm:$0xff]  ;;  %v112_v61 = vld [vmem:[#allocation5 + $0x1d8] sm:$0xff]  ;;  %v925_v62 = vpack.c.bf16 %v62_v54, %v61_v53  ;;  %v927_v0 = vpack.c.bf16 %v80_v59, %v79_v58 }
  0x35   :  { %952 = vmatprep.subr.bf16.mxu1 %v951_v43  ;;  %v957_v63 = vpack.c.bf16 %v94_v57, %v93_v55  ;;  %v63_v1 = vld [vmem:[#allocation5 + $0x50] sm:$0xff]  ;;  %v64_v2 = vld [vmem:[#allocation5 + $0x58] sm:$0xff]  ;;  %v959_v4 = vpack.c.bf16 %v112_v61, %v111_v60  ;;  %v81_v6 = vld [vmem:[#allocation5 + $0xe0] sm:$0xff] }
  0x36   :  { %922 = vmatpush3.bf16.msra.mxu0 %v921_v48  ;;  %v95_v3 = vld [vmem:[#allocation5 + $0x150] sm:$0xff]  ;;  %v96_v5 = vld [vmem:[#allocation5 + $0x158] sm:$0xff]  ;;  %v82_v7 = vld [vmem:[#allocation5 + $0xe8] sm:$0xff]  ;;  %v929_v10 = vpack.c.bf16 %v64_v2, %v63_v1 }
  0x37   :  { %924 = vmatprep.subr.bf16.mxu0 %v923_v52  ;;  %v113_v8 = vld [vmem:[#allocation5 + $0x1e0] sm:$0xff]  ;;  %v114_v9 = vld [vmem:[#allocation5 + $0x1e8] sm:$0xff]  ;;  %v961_v13 = vpack.c.bf16 %v96_v5, %v95_v3  ;;  %v931_v14 = vpack.c.bf16 %v82_v7, %v81_v6  ;;  %v83_v19 = vld [vmem:[#allocation5 + $0xf0] sm:$0xff] }
  0x38   :  { %954 = vmatpush3.bf16.msra.mxu1 %v953_v51  ;;  %v65_v11 = vld [vmem:[#allocation5 + $0x60] sm:$0xff]  ;;  %v66_v12 = vld [vmem:[#allocation5 + $0x68] sm:$0xff]  ;;  %v963_v18 = vpack.c.bf16 %v114_v9, %v113_v8  ;;  %v84_v20 = vld [vmem:[#allocation5 + $0xf8] sm:$0xff] }
  0x39   :  { %956 = vmatprep.subr.bf16.mxu1 %v955_v56  ;;  %v97_v15 = vld [vmem:[#allocation5 + $0x160] sm:$0xff]  ;;  %v98_v16 = vld [vmem:[#allocation5 + $0x168] sm:$0xff]  ;;  %v44_v21 = vld [vmem:[#allocation2 + $0x18] sm:$0xff]  ;;  %v933_v24 = vpack.c.bf16 %v66_v12, %v65_v11  ;;  %v935_v26 = vpack.c.bf16 %v84_v20, %v83_v19 }
  0x3a   :  { %926 = vmatpush3.bf16.msra.mxu0 %v925_v62  ;;  %v42_v17 = vld [vmem:[#allocation2 + $0x8] sm:$0xff]  ;;  %v115_v22 = vld [vmem:[#allocation5 + $0x1f0] sm:$0xff]  ;;  %v116_v23 = vld [vmem:[#allocation5 + $0x1f8] sm:$0xff]  ;;  %386 = vmatprep.mubr.f32.mxu1 %v44_v21  ;;  %v965_v25 = vpack.c.bf16 %v98_v16, %v97_v15 }
  0x3b   :  { %928 = vmatprep.subr.bf16.mxu0 %v927_v0  ;;  %316 = vmatprep.mubr.f32.mxu0 %v42_v17  ;;  %v67_v27 = vld [vmem:[#allocation5 + $0x70] sm:$0xff]  ;;  %v68_v28 = vld [vmem:[#allocation5 + $0x78] sm:$0xff]  ;;  %v967_v30 = vpack.c.bf16 %v116_v23, %v115_v22  ;;  %v133_v32 = vld [vmem:[#allocation5 + $0x280] sm:$0xff] }
  0x3c   :  { %958 = vmatpush3.bf16.msra.mxu1 %v957_v63  ;;  %v99_v29 = vld [vmem:[#allocation5 + $0x170] sm:$0xff]  ;;  %v100_v31 = vld [vmem:[#allocation5 + $0x178] sm:$0xff]  ;;  %v134_v33 = vld [vmem:[#allocation5 + $0x288] sm:$0xff]  ;;  %v937_v36 = vpack.c.bf16 %v68_v28, %v67_v27 }
  0x3d   :  { %960 = vmatprep.subr.bf16.mxu1 %v959_v4  ;;  %v165_v34 = vld [vmem:[#allocation5 + $0x380] sm:$0xff]  ;;  %v166_v35 = vld [vmem:[#allocation5 + $0x388] sm:$0xff]  ;;  %v969_v37 = vpack.c.bf16 %v100_v31, %v99_v29  ;;  %v971_v38 = vpack.c.bf16 %v134_v33, %v133_v32  ;;  %v135_v44 = vld [vmem:[#allocation5 + $0x290] sm:$0xff] }
  0x3e   :  { %930 = vmatpush3.bf16.msra.mxu0 %v929_v10  ;;  %v117_v39 = vld [vmem:[#allocation5 + $0x200] sm:$0xff]  ;;  %v118_v40 = vld [vmem:[#allocation5 + $0x208] sm:$0xff]  ;;  %v1003_v42 = vpack.c.bf16 %v166_v35, %v165_v34  ;;  %v136_v45 = vld [vmem:[#allocation5 + $0x298] sm:$0xff] }
  0x3f   :  { %932 = vmatprep.subr.bf16.mxu0 %v931_v14  ;;  %v149_v41 = vld [vmem:[#allocation5 + $0x300] sm:$0xff]  ;;  %v150_v43 = vld [vmem:[#allocation5 + $0x308] sm:$0xff]  ;;  %v167_v46 = vld [vmem:[#allocation5 + $0x390] sm:$0xff]  ;;  %v973_v49 = vpack.c.bf16 %v118_v40, %v117_v39  ;;  %v975_v52 = vpack.c.bf16 %v136_v45, %v135_v44 }
  0x40   :  { %962 = vmatpush3.bf16.msra.mxu1 %v961_v13  ;;  %v168_v47 = vld [vmem:[#allocation5 + $0x398] sm:$0xff]  ;;  %v41_v48 = vld [vmem:[#allocation2] sm:$0xff]  ;;  %v43_v50 = vld [vmem:[#allocation2 + $0x10] sm:$0xff]  ;;  %v1005_v51 = vpack.c.bf16 %v150_v43, %v149_v41 }
  0x41   :  { %964 = vmatprep.subr.bf16.mxu1 %v963_v18  ;;  %v119_v53 = vld [vmem:[#allocation5 + $0x210] sm:$0xff]  ;;  %v120_v54 = vld [vmem:[#allocation5 + $0x218] sm:$0xff]  ;;  %v1007_v56 = vpack.c.bf16 %v168_v47, %v167_v46  ;;  %v137_v58 = vld [vmem:[#allocation5 + $0x2a0] sm:$0xff] }
  0x42   :  { %934 = vmatpush3.bf16.msra.mxu0 %v933_v24  ;;  %v151_v55 = vld [vmem:[#allocation5 + $0x310] sm:$0xff]  ;;  %v152_v57 = vld [vmem:[#allocation5 + $0x318] sm:$0xff]  ;;  %v138_v59 = vld [vmem:[#allocation5 + $0x2a8] sm:$0xff]  ;;  %v977_v62 = vpack.c.bf16 %v120_v54, %v119_v53 }
  0x43   :  { %936 = vmatprep.subr.bf16.mxu0 %v935_v26  ;;  %v169_v60 = vld [vmem:[#allocation5 + $0x3a0] sm:$0xff]  ;;  %v170_v61 = vld [vmem:[#allocation5 + $0x3a8] sm:$0xff]  ;;  %v1009_v63 = vpack.c.bf16 %v152_v57, %v151_v55  ;;  %v979_v0 = vpack.c.bf16 %v138_v59, %v137_v58  ;;  %v139_v6 = vld [vmem:[#allocation5 + $0x2b0] sm:$0xff] }
  0x44   :  { %966 = vmatpush3.bf16.msra.mxu1 %v965_v25  ;;  %v121_v1 = vld [vmem:[#allocation5 + $0x220] sm:$0xff]  ;;  %v122_v2 = vld [vmem:[#allocation5 + $0x228] sm:$0xff]  ;;  %v1011_v4 = vpack.c.bf16 %v170_v61, %v169_v60  ;;  %v140_v7 = vld [vmem:[#allocation5 + $0x2b8] sm:$0xff] }
  0x45   :  { %968 = vmatprep.subr.bf16.mxu1 %v967_v30  ;;  %v153_v3 = vld [vmem:[#allocation5 + $0x320] sm:$0xff]  ;;  %v154_v5 = vld [vmem:[#allocation5 + $0x328] sm:$0xff]  ;;  %v171_v8 = vld [vmem:[#allocation5 + $0x3b0] sm:$0xff]  ;;  %v981_v10 = vpack.c.bf16 %v122_v2, %v121_v1  ;;  %v983_v12 = vpack.c.bf16 %v140_v7, %v139_v6 }
  0x46   :  { %938 = vmatpush3.bf16.msra.mxu0 %v937_v36  ;;  %v172_v9 = vld [vmem:[#allocation5 + $0x3b8] sm:$0xff]  ;;  %v1013_v11 = vpack.c.bf16 %v154_v5, %v153_v3  ;;  %v123_v13 = vld [vmem:[#allocation5 + $0x230] sm:$0xff]  ;;  %v141_v18 = vld [vmem:[#allocation5 + $0x2c0] sm:$0xff] }
  0x47   :  { %972 = vmatprep.subr.bf16.mxu0 %v971_v38  ;;  %v124_v14 = vld [vmem:[#allocation5 + $0x238] sm:$0xff]  ;;  %v155_v15 = vld [vmem:[#allocation5 + $0x330] sm:$0xff]  ;;  %v1015_v16 = vpack.c.bf16 %v172_v9, %v171_v8  ;;  %v142_v19 = vld [vmem:[#allocation5 + $0x2c8] sm:$0xff] }
  0x48   :  { %970 = vmatpush3.bf16.msra.mxu1 %v969_v37  ;;  %v156_v17 = vld [vmem:[#allocation5 + $0x338] sm:$0xff]  ;;  %v173_v20 = vld [vmem:[#allocation5 + $0x3c0] sm:$0xff]  ;;  %v174_v21 = vld [vmem:[#allocation5 + $0x3c8] sm:$0xff]  ;;  %v985_v22 = vpack.c.bf16 %v124_v14, %v123_v13  ;;  %v987_v26 = vpack.c.bf16 %v142_v19, %v141_v18 }
  0x49   :  { %1004 = vmatprep.subr.bf16.mxu1 %v1003_v42  ;;  %317 = vmatmul.mubr.f32.vlgmr.msra.gmra.mrb[0].mxu0 %v41_v48  ;;  %v125_v23 = vld [vmem:[#allocation5 + $0x240] sm:$0xff]  ;;  %v46_v24 = vld [vmem:[#allocation2 + $0x28] sm:$0xff]  ;;  %v1017_v25 = vpack.c.bf16 %v156_v17, %v155_v15  ;;  %v48_v29 = vld [vmem:[#allocation2 + $0x38] sm:$0xff]  ;;  %v1019_v30 = vpack.c.bf16 %v174_v21, %v173_v20 }
  0x4a   :  { %974 = vmatpush3.bf16.msra.mxu0 %v973_v49  ;;  %v126_v27 = vld [vmem:[#allocation5 + $0x248] sm:$0xff]  ;;  %v157_v28 = vld [vmem:[#allocation5 + $0x340] sm:$0xff]  ;;  %v143_v32 = vld [vmem:[#allocation5 + $0x2d0] sm:$0xff]  ;;  %456 = vmatprep.mubr.f32.mxu0 %v46_v24 }
  0x4b   :  { %387 = vmatmul.mubr.f32.vlgmr.msra.gmra.mrb[0].mxu1 %v43_v50  ;;  %976 = vmatprep.subr.bf16.mxu0 %v975_v52  ;;  %v158_v31 = vld [vmem:[#allocation5 + $0x348] sm:$0xff]  ;;  %v144_v33 = vld [vmem:[#allocation5 + $0x2d8] sm:$0xff]  ;;  %v175_v34 = vld [vmem:[#allocation5 + $0x3d0] sm:$0xff]  ;;  %v989_v36 = vpack.c.bf16 %v126_v27, %v125_v23 }
  0x4c   :  { %1006 = vmatpush3.bf16.msra.mxu1 %v1005_v51  ;;  %v176_v35 = vld [vmem:[#allocation5 + $0x3d8] sm:$0xff]  ;;  %526 = vmatprep.mubr.f32.mxu1 %v48_v29  ;;  %v1021_v37 = vpack.c.bf16 %v158_v31, %v157_v28  ;;  %v991_v38 = vpack.c.bf16 %v144_v33, %v143_v32  ;;  %v127_v39 = vld [vmem:[#allocation5 + $0x250] sm:$0xff]  ;;  %v145_v44 = vld [vmem:[#allocation5 + $0x2e0] sm:$0xff] }
  0x4d   :  { %1008 = vmatprep.subr.bf16.mxu1 %v1007_v56  ;;  %v128_v40 = vld [vmem:[#allocation5 + $0x258] sm:$0xff]  ;;  %v159_v41 = vld [vmem:[#allocation5 + $0x350] sm:$0xff]  ;;  %v1023_v42 = vpack.c.bf16 %v176_v35, %v175_v34  ;;  %v146_v45 = vld [vmem:[#allocation5 + $0x2e8] sm:$0xff] }
  0x4e   :  { %978 = vmatpush3.bf16.msra.mxu0 %v977_v62  ;;  %v160_v43 = vld [vmem:[#allocation5 + $0x358] sm:$0xff]  ;;  %v177_v46 = vld [vmem:[#allocation5 + $0x3e0] sm:$0xff]  ;;  %v178_v47 = vld [vmem:[#allocation5 + $0x3e8] sm:$0xff]  ;;  %v993_v48 = vpack.c.bf16 %v128_v40, %v127_v39  ;;  %v995_v50 = vpack.c.bf16 %v146_v45, %v145_v44 }
  0x4f   :  { %980 = vmatprep.subr.bf16.mxu0 %v979_v0  ;;  %v1025_v49 = vpack.c.bf16 %v160_v43, %v159_v41  ;;  %v129_v51 = vld [vmem:[#allocation5 + $0x260] sm:$0xff]  ;;  %v130_v52 = vld [vmem:[#allocation5 + $0x268] sm:$0xff]  ;;  %v1027_v54 = vpack.c.bf16 %v178_v47, %v177_v46  ;;  %v147_v56 = vld [vmem:[#allocation5 + $0x2f0] sm:$0xff] }
  0x50   :  { %1010 = vmatpush3.bf16.msra.mxu1 %v1009_v63  ;;  %v161_v53 = vld [vmem:[#allocation5 + $0x360] sm:$0xff]  ;;  %v162_v55 = vld [vmem:[#allocation5 + $0x368] sm:$0xff]  ;;  %v148_v57 = vld [vmem:[#allocation5 + $0x2f8] sm:$0xff]  ;;  %v997_v60 = vpack.c.bf16 %v130_v52, %v129_v51 }
  0x51   :  { %1012 = vmatprep.subr.bf16.mxu1 %v1011_v4  ;;  %v179_v58 = vld [vmem:[#allocation5 + $0x3f0] sm:$0xff]  ;;  %v180_v59 = vld [vmem:[#allocation5 + $0x3f8] sm:$0xff]  ;;  %v1029_v61 = vpack.c.bf16 %v162_v55, %v161_v53  ;;  %v999_v62 = vpack.c.bf16 %v148_v57, %v147_v56  ;;  %v197_v4 = vld [vmem:[#allocation5 + $0x480] sm:$0xff] }
  0x52   :  { %982 = vmatpush3.bf16.msra.mxu0 %v981_v10  ;;  %v131_v63 = vld [vmem:[#allocation5 + $0x270] sm:$0xff]  ;;  %v132_v0 = vld [vmem:[#allocation5 + $0x278] sm:$0xff]  ;;  %v1031_v2 = vpack.c.bf16 %v180_v59, %v179_v58  ;;  %v198_v5 = vld [vmem:[#allocation5 + $0x488] sm:$0xff] }
  0x53   :  { %984 = vmatprep.subr.bf16.mxu0 %v983_v12  ;;  %v163_v1 = vld [vmem:[#allocation5 + $0x370] sm:$0xff]  ;;  %v164_v3 = vld [vmem:[#allocation5 + $0x378] sm:$0xff]  ;;  %v229_v6 = vld [vmem:[#allocation5 + $0x580] sm:$0xff]  ;;  %v1001_v8 = vpack.c.bf16 %v132_v0, %v131_v63  ;;  %v1035_v10 = vpack.c.bf16 %v198_v5, %v197_v4 }
  0x54   :  { %1014 = vmatpush3.bf16.msra.mxu1 %v1013_v11  ;;  %v230_v7 = vld [vmem:[#allocation5 + $0x588] sm:$0xff]  ;;  %v1033_v9 = vpack.c.bf16 %v164_v3, %v163_v1  ;;  %v181_v11 = vld [vmem:[#allocation5 + $0x400] sm:$0xff]  ;;  %v200_v17 = vld [vmem:[#allocation5 + $0x498] sm:$0xff] }
  0x55   :  { %1016 = vmatprep.subr.bf16.mxu1 %v1015_v16  ;;  %v182_v12 = vld [vmem:[#allocation5 + $0x408] sm:$0xff]  ;;  %v213_v13 = vld [vmem:[#allocation5 + $0x500] sm:$0xff]  ;;  %v1067_v14 = vpack.c.bf16 %v230_v7, %v229_v6  ;;  %v199_v16 = vld [vmem:[#allocation5 + $0x490] sm:$0xff] }
  0x56   :  { %986 = vmatpush3.bf16.msra.mxu0 %v985_v22  ;;  %v214_v15 = vld [vmem:[#allocation5 + $0x508] sm:$0xff]  ;;  %v231_v18 = vld [vmem:[#allocation5 + $0x590] sm:$0xff]  ;;  %v232_v19 = vld [vmem:[#allocation5 + $0x598] sm:$0xff]  ;;  %v1037_v21 = vpack.c.bf16 %v182_v12, %v181_v11  ;;  %v1039_v24 = vpack.c.bf16 %v200_v17, %v199_v16 }
  0x57   :  { %988 = vmatprep.subr.bf16.mxu0 %v987_v26  ;;  %v45_v20 = vld [vmem:[#allocation2 + $0x20] sm:$0xff]  ;;  %v47_v22 = vld [vmem:[#allocation2 + $0x30] sm:$0xff]  ;;  %v1069_v23 = vpack.c.bf16 %v214_v15, %v213_v13  ;;  %v184_v26 = vld [vmem:[#allocation5 + $0x418] sm:$0xff]  ;;  %v1071_v28 = vpack.c.bf16 %v232_v19, %v231_v18 }
  0x58   :  { %1018 = vmatpush3.bf16.msra.mxu1 %v1017_v25  ;;  %v183_v25 = vld [vmem:[#allocation5 + $0x410] sm:$0xff]  ;;  %v216_v29 = vld [vmem:[#allocation5 + $0x518] sm:$0xff]  ;;  %v202_v31 = vld [vmem:[#allocation5 + $0x4a8] sm:$0xff] }
  0x59   :  { %1020 = vmatprep.subr.bf16.mxu1 %v1019_v30  ;;  %v215_v27 = vld [vmem:[#allocation5 + $0x510] sm:$0xff]  ;;  %v201_v30 = vld [vmem:[#allocation5 + $0x4a0] sm:$0xff]  ;;  %v234_v33 = vld [vmem:[#allocation5 + $0x5a8] sm:$0xff]  ;;  %v1041_v35 = vpack.c.bf16 %v184_v26, %v183_v25 }
  0x5a   :  { %990 = vmatpush3.bf16.msra.mxu0 %v989_v36  ;;  %v233_v32 = vld [vmem:[#allocation5 + $0x5a0] sm:$0xff]  ;;  %v50_v34 = vld [vmem:[#allocation2 + $0x48] sm:$0xff]  ;;  %v52_v36 = vld [vmem:[#allocation2 + $0x58] sm:$0xff] }
  0x5b   :  { %992 = vmatprep.subr.bf16.mxu0 %v991_v38  ;;  %v1043_v38 = vpack.c.bf16 %v202_v31, %v201_v30  ;;  %v185_v39 = vld [vmem:[#allocation5 + $0x420] sm:$0xff]  ;;  %v186_v40 = vld [vmem:[#allocation5 + $0x428] sm:$0xff]  ;;  %v203_v44 = vld [vmem:[#allocation5 + $0x4b0] sm:$0xff] }
  0x5c   :  { %1022 = vmatpush3.bf16.msra.mxu1 %v1021_v37  ;;  %v1073_v37 = vpack.c.bf16 %v216_v29, %v215_v27  ;;  %v217_v41 = vld [vmem:[#allocation5 + $0x520] sm:$0xff]  ;;  %v218_v43 = vld [vmem:[#allocation5 + $0x528] sm:$0xff]  ;;  %v204_v45 = vld [vmem:[#allocation5 + $0x4b8] sm:$0xff] }
  0x5d   :  { %1024 = vmatprep.subr.bf16.mxu1 %v1023_v42  ;;  %v1075_v42 = vpack.c.bf16 %v234_v33, %v233_v32  ;;  %v235_v46 = vld [vmem:[#allocation5 + $0x5b0] sm:$0xff]  ;;  %v236_v47 = vld [vmem:[#allocation5 + $0x5b8] sm:$0xff]  ;;  %v205_v56 = vld [vmem:[#allocation5 + $0x4c0] sm:$0xff] }
  0x5e   :  { %994 = vmatpush3.bf16.msra.mxu0 %v993_v48  ;;  %v1045_v48 = vpack.c.bf16 %v186_v40, %v185_v39  ;;  %v187_v51 = vld [vmem:[#allocation5 + $0x430] sm:$0xff]  ;;  %v188_v52 = vld [vmem:[#allocation5 + $0x438] sm:$0xff]  ;;  %v206_v57 = vld [vmem:[#allocation5 + $0x4c8] sm:$0xff] }
  0x5f   :  { %996 = vmatprep.subr.bf16.mxu0 %v995_v50  ;;  %v1047_v50 = vpack.c.bf16 %v204_v45, %v203_v44  ;;  %v219_v53 = vld [vmem:[#allocation5 + $0x530] sm:$0xff]  ;;  %v220_v55 = vld [vmem:[#allocation5 + $0x538] sm:$0xff]  ;;  %v237_v58 = vld [vmem:[#allocation5 + $0x5c0] sm:$0xff] }
  0x60   :  { %1026 = vmatpush3.bf16.msra.mxu1 %v1025_v49  ;;  %v1077_v49 = vpack.c.bf16 %v218_v43, %v217_v41  ;;  %v238_v59 = vld [vmem:[#allocation5 + $0x5c8] sm:$0xff]  ;;  %v189_v63 = vld [vmem:[#allocation5 + $0x440] sm:$0xff]  ;;  %v207_v4 = vld [vmem:[#allocation5 + $0x4d0] sm:$0xff] }
  0x61   :  { %1028 = vmatprep.subr.bf16.mxu1 %v1027_v54  ;;  %v1079_v54 = vpack.c.bf16 %v236_v47, %v235_v46  ;;  %v190_v0 = vld [vmem:[#allocation5 + $0x448] sm:$0xff]  ;;  %v221_v1 = vld [vmem:[#allocation5 + $0x540] sm:$0xff]  ;;  %v208_v5 = vld [vmem:[#allocation5 + $0x4d8] sm:$0xff] }
  0x62   :  { %998 = vmatpush3.bf16.msra.mxu0 %v997_v60  ;;  %v1049_v60 = vpack.c.bf16 %v188_v52, %v187_v51  ;;  %v222_v3 = vld [vmem:[#allocation5 + $0x548] sm:$0xff]  ;;  %v239_v6 = vld [vmem:[#allocation5 + $0x5d0] sm:$0xff]  ;;  %v240_v7 = vld [vmem:[#allocation5 + $0x5d8] sm:$0xff] }
  0x63   :  { %1000 = vmatprep.subr.bf16.mxu0 %v999_v62  ;;  %v1051_v62 = vpack.c.bf16 %v206_v57, %v205_v56  ;;  %v191_v11 = vld [vmem:[#allocation5 + $0x450] sm:$0xff]  ;;  %v192_v12 = vld [vmem:[#allocation5 + $0x458] sm:$0xff]  ;;  %v209_v16 = vld [vmem:[#allocation5 + $0x4e0] sm:$0xff] }
  0x64   :  { %1030 = vmatpush3.bf16.msra.mxu1 %v1029_v61  ;;  %v1081_v61 = vpack.c.bf16 %v220_v55, %v219_v53  ;;  %v223_v13 = vld [vmem:[#allocation5 + $0x550] sm:$0xff]  ;;  %v224_v15 = vld [vmem:[#allocation5 + $0x558] sm:$0xff]  ;;  %v210_v17 = vld [vmem:[#allocation5 + $0x4e8] sm:$0xff] }
  0x65   :  { %1032 = vmatprep.subr.bf16.mxu1 %v1031_v2  ;;  %v1083_v2 = vpack.c.bf16 %v238_v59, %v237_v58  ;;  %v241_v18 = vld [vmem:[#allocation5 + $0x5e0] sm:$0xff]  ;;  %v242_v19 = vld [vmem:[#allocation5 + $0x5e8] sm:$0xff]  ;;  %v212_v29 = vld [vmem:[#allocation5 + $0x4f8] sm:$0xff] }
  0x66   :  { %1002 = vmatpush3.bf16.msra.mxu0 %v1001_v8  ;;  %v1053_v8 = vpack.c.bf16 %v190_v0, %v189_v63  ;;  %v225_v25 = vld [vmem:[#allocation5 + $0x560] sm:$0xff]  ;;  %v1091_v26 = vpack.c.bf16 %v242_v19, %v241_v18  ;;  %v226_v27 = vld [vmem:[#allocation5 + $0x568] sm:$0xff]  ;;  %v243_v30 = vld [vmem:[#allocation5 + $0x5f0] sm:$0xff] }
  0x67   :  { %1036 = vmatprep.subr.bf16.mxu0 %v1035_v10  ;;  %v1055_v10 = vpack.c.bf16 %v208_v5, %v207_v4  ;;  %v244_v31 = vld [vmem:[#allocation5 + $0x5f8] sm:$0xff]  ;;  %v1093_v33 = vpack.c.bf16 %v226_v27, %v225_v25  ;;  %v51_v43 = vld [vmem:[#allocation2 + $0x50] sm:$0xff]  ;;  %v695_v45 = vld [vmem:[%s1253_s2] ss:$0 sm:$0xff]  ;;  %s1184_s2 = smov [#allocation7]  }
  0x68   :  { %1034 = vmatpush3.bf16.msra.mxu1 %v1033_v9  ;;  %v1085_v9 = vpack.c.bf16 %v222_v3, %v221_v1  ;;  %v228_v39 = vld [vmem:[#allocation5 + $0x578] sm:$0xff]  ;;  %s685_s11 = sshll.u32 %s1184_s2, 4  ;;  %s686_s11 = int_to_ptr.vmem [resolvable:$true] %s685_s11 }
  0x69   :  { %1068 = vmatprep.subr.bf16.mxu1 %v1067_v14  ;;  %457 = vmatmul.mubr.f32.vlgmr.msra.gmra.mrb[2].mxu0 %v45_v20  ;;  %v1087_v14 = vpack.c.bf16 %v240_v7, %v239_v6  ;;  %v1057_v20 = vpack.c.bf16 %v192_v12, %v191_v11  ;;  %s1152_s12 = scalar_lea.vmem %s686_s11, 128  ;;  %p1157_p3 = scmp.lt.s32.totalorder %s686_s11, %s686_s11 }
  0x6a   :  { %1038 = vmatpush3.bf16.msra.mxu0 %v1037_v21  ;;  %596 = vmatprep.mubr.f32.mxu0 %v50_v34  ;;  %v1089_v21 = vpack.c.bf16 %v224_v15, %v223_v13  ;;  %p1153_p2 = scmp.ne.s32.totalorder %s686_s11, %s1152_s12  ;;  %p1158_p4 = scmp.lt.s32.totalorder %s1152_s12, %s1152_s12 }
  0x6b   :  { %527 = vmatmul.mubr.f32.vlgmr.msra.gmra.mrb[2].mxu1 %v47_v22  ;;  %1040 = vmatprep.subr.bf16.mxu0 %v1039_v24  ;;  %v1059_v22 = vpack.c.bf16 %v210_v17, %v209_v16  ;;  %v194_v24 = vld [vmem:[#allocation5 + $0x468] sm:$0xff] }
  0x6c   :  { %1070 = vmatpush3.bf16.msra.mxu1 %v1069_v23  ;;  %666 = vmatprep.mubr.f32.mxu1 %v52_v36  ;;  %v193_v23 = vld [vmem:[#allocation5 + $0x460] sm:$0xff]  ;;  %v196_v36 = vld [vmem:[#allocation5 + $0x478] sm:$0xff]  ;;  %p1159_p5 = por %p1158_p4, %p1157_p3 }
  0x6d   :  { %1072 = vmatprep.subr.bf16.mxu1 %v1071_v28  ;;  %v211_v28 = vld [vmem:[#allocation5 + $0x4f0] sm:$0xff]  ;;  %v1061_v32 = vpack.c.bf16 %v194_v24, %v193_v23 }
  0x6e   :  { %1042 = vmatpush3.bf16.msra.mxu0 %v1041_v35  ;;  %v1063_v34 = vpack.c.bf16 %v212_v29, %v211_v28  ;;  %v195_v35 = vld [vmem:[#allocation5 + $0x470] sm:$0xff]  ;;  %p1160_p6 = pnand %p1159_p5, %p1153_p2 }
  0x6f   :  { %1044 = vmatprep.subr.bf16.mxu0 %v1043_v38  ;;  %v227_v38 = vld [vmem:[#allocation5 + $0x570] sm:$0xff]  ;;  %v1065_v40 = vpack.c.bf16 %v196_v36, %v195_v35 }
  0x70   :  { %1074 = vmatpush3.bf16.msra.mxu1 %v1073_v37  ;;  %v1095_v37 = vpack.c.bf16 %v244_v31, %v243_v30  ;;  %v1097_v41 = vpack.c.bf16 %v228_v39, %v227_v38 }
  0x71   :  { %1076 = vmatprep.subr.bf16.mxu1 %v1075_v42  ;;  %v49_v42 = vld [vmem:[#allocation2 + $0x40] sm:$0xff] }
  0x72   :  { %1046 = vmatpush3.bf16.msra.mxu0 %v1045_v48 }
  0x73   :  { %1048 = vmatprep.subr.bf16.mxu0 %v1047_v50 }
  0x74   :  { %1078 = vmatpush3.bf16.msra.mxu1 %v1077_v49 }
  0x75   :  { %1080 = vmatprep.subr.bf16.mxu1 %v1079_v54 }
  0x76   :  { %1050 = vmatpush3.bf16.msra.mxu0 %v1049_v60 }
  0x77   :  { %1052 = vmatprep.subr.bf16.mxu0 %v1051_v62 }
  0x78   :  { %1082 = vmatpush3.bf16.msra.mxu1 %v1081_v61 }
  0x79   :  { %1084 = vmatprep.subr.bf16.mxu1 %v1083_v2 }
  0x7a   :  { %1054 = vmatpush3.bf16.msra.mxu0 %v1053_v8 }
  0x7b   :  { %1056 = vmatprep.subr.bf16.mxu0 %v1055_v10 }
  0x7c   :  { %1086 = vmatpush3.bf16.msra.mxu1 %v1085_v9 }
  0x7d   :  { %1088 = vmatprep.subr.bf16.mxu1 %v1087_v14 }
  0x7e   :  { %1058 = vmatpush3.bf16.msra.mxu0 %v1057_v20 }
  0x7f   :  { %1060 = vmatprep.subr.bf16.mxu0 %v1059_v22 }
  0x80   :  { %1090 = vmatpush3.bf16.msra.mxu1 %v1089_v21 }
  0x81   :  { %1092 = vmatprep.subr.bf16.mxu1 %v1091_v26 }
  0x82   :  { %1062 = vmatpush3.bf16.msra.mxu0 %v1061_v32 }
  0x83   :  { %1064 = vmatprep.subr.bf16.mxu0 %v1063_v34 }
  0x84   :  { %1094 = vmatpush3.bf16.msra.mxu1 %v1093_v33 }
  0x85   :  { %1096 = vmatprep.subr.bf16.mxu1 %v1095_v37 }
  0x86   :  { %1066 = vmatpush3.bf16.msra.mxu0 %v1065_v40 }
  0x88   :  { %1098 = vmatpush3.bf16.msra.mxu1 %v1097_v41 }
  0x89   :  { %597 = vmatmul.mubr.f32.vlgmr.msra.gmra.mrb[4].mxu0 %v49_v42 }
  0x8b   :  { %667 = vmatmul.mubr.f32.vlgmr.msra.gmra.mrb[4].mxu1 %v51_v43 }
 0x11c   :  { %v729_v44 = vpop.f32.mrb[0].mxu0 }
 0x11d   :  { %v730_v46 = vpop.f32.mrb[1].mxu0 }
 0x11e   :  { %v764_v47 = vpop.f32.mrb[0].mxu1  ;;  %v731_v48 = vadd.f32 %v730_v46, %v729_v44 }
 0x11f   :  { %v765_v49 = vpop.f32.mrb[1].mxu1 }
 0x120   :  { %v766_v50 = vadd.f32 %v765_v49, %v764_v47  ;;  %v319_v51 = vadd.f32 %v731_v48, %v695_v45 }
 0x122   :  { %v389_v52 = vadd.f32 %v766_v50, %v319_v51 }
 0x13c   :  { %v799_v53 = vpop.f32.mrb[2].mxu0 }
 0x13d   :  { %v800_v54 = vpop.f32.mrb[3].mxu0 }
 0x13e   :  { %v834_v55 = vpop.f32.mrb[2].mxu1  ;;  %v801_v56 = vadd.f32 %v800_v54, %v799_v53 }
 0x13f   :  { %v835_v57 = vpop.f32.mrb[3].mxu1 }
 0x140   :  { %v836_v58 = vadd.f32 %v835_v57, %v834_v55  ;;  %v459_v59 = vadd.f32 %v801_v56, %v389_v52 }
 0x142   :  { %v529_v60 = vadd.f32 %v836_v58, %v459_v59 }
 0x15c   :  { %v869_v61 = vpop.f32.mrb[4].mxu0 }
 0x15d   :  { %v870_v62 = vpop.f32.mrb[5].mxu0 }
 0x15e   :  { %v904_v63 = vpop.f32.mrb[4].mxu1  ;;  %v871_v0 = vadd.f32 %v870_v62, %v869_v61 }
 0x15f   :  { %v905_v1 = vpop.f32.mrb[5].mxu1 }
 0x160   :  { %v906_v2 = vadd.f32 %v905_v1, %v904_v63  ;;  %v599_v3 = vadd.f32 %v871_v0, %v529_v60 }
 0x162   :  { %v669_v4 = vadd.f32 %v906_v2, %v599_v3 }
 0x164   :  { %v696_v5 = vmul.f32 -1.442695, %v669_v4 }
 0x166   :  { %1104 = vpow2.f32 %v696_v5 }
 0x170   :  { %v1105_v6 = vpop.eup %1104 }
 0x171   :  { %v675_v7 = vadd.f32 1.0, %v1105_v6 }
 0x173   :  { %1106 = vrcp.f32 %v675_v7 }
 0x17d   :  { %v1107_v8 = vpop.eup %1106 }
 0x17e   :  { %678 = vst [vmem:[#allocation7] sm:$0xff] %v1107_v8 }
 0x17f   :  { %1163 = shalt.err (!%p1160_p6)
}
 0x180   :  { %s1164_s15 = scalar_lea.hbm %s1254_s3, 128 }
 0x181   :  { %p1165_p7 = scmp.ne.s32.totalorder %s1254_s3, %s1164_s15  ;;  %p1168_p8 = scmp.lt.u32.totalorder %s1164_s15, %s1254_s3 }
 0x183   :  { %p1170_p9 = pnand %p1168_p8, %p1165_p7 }
 0x185   :  { %1173 = shalt.err (!%p1170_p9)
}
 0x186   :  { %688 = dma.vmem_to_hbm [thread:$0]  %s686_s11, 128, %s1254_s3, [#allocation4]  }
 0x187   :  { %1178 = dma.done.wait [#allocation4], 128  }
 0x188   :  { %1179 = vsyncadd [#allocation4], 4294967168 }
 0x189   :  { %692 = vsyncpa [#allocation3], 1 }
 0x18a   :  { %693 = vsyncpa [#allocation6], 1 }
 0x18b   :  { %694 = vsyncpa [#allocation4], 1 }

</bundles_post_ra>
